<compile_context>
chip_gen: v7x
topology: tpu7x:2x2x1
jax: 0.10.0
libtpu: 0.0.40
codegen_flags: <defaults>
</compile_context>

<pallas_src>
import jax
import jax.numpy as jnp
from jax.experimental import pallas as pl
from jax.experimental.pallas import tpu as pltpu


def _round_up(x, m):
    return (x + m - 1) // m * m


IMGS_PER_STEP = 8   # 8 images x 64 rows = 512-row MXU M tile; 8-sublane packed stores


# ---------------------------------------------------------------------------
# Fused kernel: stem conv (one big matmul over im2col patches) + folded-BN
# shift + ReLU + global average pool + classifier head, all in one grid step.
# ---------------------------------------------------------------------------
def fused_stem_head_kernel(patches_ref, w_stem_ref, shift_ref, w_head_ref,
                           b_head_ref, pooled_ref, logits_ref):
    B, R, Kpad = patches_ref.shape          # (imgs/step, OH*OW, padded taps*Cin)
    Cout = w_stem_ref.shape[1]

    # Single full-contraction MXU matmul for all images in this block (bf16 in,
    # f32 accumulate).  Leading-dim collapse is sublane-aligned -> free.
    p2d = patches_ref[...].reshape(B * R, Kpad)
    feat = jnp.dot(p2d, w_stem_ref[...], preferred_element_type=jnp.float32)

    # BN scale is pre-folded into w_stem; only shift + ReLU left on the VPU.
    feat = jnp.maximum(feat + shift_ref[...], 0.0)

    # Fused avg_pool2d(kernel_size=8): per-image mean over the 8x8 map.
    pooled = jnp.mean(feat.reshape(B, R, Cout), axis=1)          # (B, Cout) f32
    pooled_ref[...] = pooled

    # Fused classifier head (dropout is identity in eval mode); lane-dense
    # logits store (classes padded to 128 in the wrapper).
    logits_ref[...] = (
        jnp.dot(pooled.astype(jnp.bfloat16), w_head_ref[...],
                preferred_element_type=jnp.float32) + b_head_ref[...])


# ---------------------------------------------------------------------------
# Wrapper glue (plain JAX): lane-dense im2col + weight folding + padding.
# ---------------------------------------------------------------------------
def _im2col(x_nhwc, KH, KW, stride, OH, OW):
    taps = []
    for ky in range(KH):
        for kx in range(KW):
            taps.append(
                x_nhwc[:, ky:ky + stride * OH:stride, kx:kx + stride * OW:stride, :])
    return jnp.concatenate(taps, axis=-1)          # [N, OH, OW, KH*KW*Cin]


def image_bone_forward(x_nchw, params):
    w_conv, bn_scale, bn_shift, w_lin, b_lin = params
    KH, KW, Cin, Cout = w_conv.shape
    N, _, H, W = x_nchw.shape
    stride = 2
    OH = (H - KH) // stride + 1
    OW = (W - KW) // stride + 1
    # avg_pool2d(kernel_size=8) pools the full map only because the (surrogate)
    # backbone ends in an 8x8 feature map, exactly like InceptionV3.
    assert OH == 8 and OW == 8
    R = OH * OW

    Kraw = KH * KW * Cin
    Kpad = _round_up(max(Kraw, 128), 128)          # lane-dense contraction dim
    Kcls = w_lin.shape[1]
    Kcls_pad = _round_up(max(Kcls, 128), 128)      # lane-dense logits store
    Np = _round_up(N, IMGS_PER_STEP)

    # ---- layout glue (jnp.pad only — no .at[].set() scatters) --------------
    x = jnp.transpose(x_nchw, (0, 2, 3, 1))                       # NCHW -> NHWC
    patches = _im2col(x, KH, KW, stride, OH, OW).reshape(N, R, Kraw)
    patches = jnp.pad(patches, ((0, Np - N), (0, 0), (0, Kpad - Kraw)))
    patches = patches.astype(jnp.bfloat16)

    # Fold BN scale into the conv weight (per-output-channel column scale).
    w_folded = (w_conv * bn_scale.reshape(1, 1, 1, Cout)).reshape(Kraw, Cout)
    w_stem = jnp.pad(w_folded, ((0, Kpad - Kraw), (0, 0))).astype(jnp.bfloat16)
    shift = bn_shift.reshape(1, Cout).astype(jnp.float32)

    w_head = jnp.pad(w_lin, ((0, 0), (0, Kcls_pad - Kcls))).astype(jnp.bfloat16)
    b_head = jnp.pad(b_lin.reshape(1, Kcls),
                     ((0, 0), (0, Kcls_pad - Kcls))).astype(jnp.float32)

    pooled, logits = pl.pallas_call(
        fused_stem_head_kernel,
        out_shape=(jax.ShapeDtypeStruct((Np, Cout), jnp.float32),
                   jax.ShapeDtypeStruct((Np, Kcls_pad), jnp.float32)),
        grid_spec=pltpu.PrefetchScalarGridSpec(
            num_scalar_prefetch=0,
            grid=(Np // IMGS_PER_STEP,),
            in_specs=[
                pl.BlockSpec((IMGS_PER_STEP, R, Kpad), lambda i: (i, 0, 0)),
                # TODO(synk): add pipeline_mode=pl.Buffered(1) on these
                # grid-invariant weight blocks once real InceptionV3 weights
                # make v7x's 64 MiB VMEM tight; at KB scale double-buffering
                # them is free.
                pl.BlockSpec((Kpad, Cout), lambda i: (0, 0)),
                pl.BlockSpec((1, Cout), lambda i: (0, 0)),
                pl.BlockSpec((Cout, Kcls_pad), lambda i: (0, 0)),
                pl.BlockSpec((1, Kcls_pad), lambda i: (0, 0)),
            ],
            out_specs=(
                pl.BlockSpec((IMGS_PER_STEP, Cout), lambda i: (i, 0)),
                pl.BlockSpec((IMGS_PER_STEP, Kcls_pad), lambda i: (i, 0)),
            ),
        ),
        compiler_params=pltpu.CompilerParams(
            dimension_semantics=("parallel",),      # >=2 steps for N>=16 -> both v7x TCs
            vmem_limit_bytes=32 * 1024 * 1024,      # fits v7x's 64 MiB VMEM
        ),
    )(patches, w_stem, shift, w_head, b_head)

    return pooled[:N], logits[:N, :Kcls]            # == (x, output) in eval mode


# ---------------------------------------------------------------------------
# Pure-JAX reference (identical math, identical bf16 folds/casts).
# ---------------------------------------------------------------------------
def reference_forward(x_nchw, params):
    w_conv, bn_scale, bn_shift, w_lin, b_lin = params
    KH, KW, Cin, Cout = w_conv.shape
    N = x_nchw.shape[0]
    x = jnp.transpose(x_nchw, (0, 2, 3, 1))
    patches = _im2col(x, KH, KW, 2, 8, 8).reshape(N * 64, KH * KW * Cin)
    w_folded = (w_conv * bn_scale.reshape(1, 1, 1, Cout)).reshape(KH * KW * Cin, Cout)
    feat = jnp.dot(patches.astype(jnp.bfloat16), w_folded.astype(jnp.bfloat16),
                   preferred_element_type=jnp.float32)
    feat = jnp.maximum(feat + bn_shift.reshape(1, Cout), 0.0)
    pooled = feat.reshape(N, 64, Cout).mean(axis=1)
    logits = jnp.dot(pooled.astype(jnp.bfloat16), w_lin.astype(jnp.bfloat16),
                     preferred_element_type=jnp.float32) + b_lin.reshape(1, -1)
    return pooled, logits


if __name__ == "__main__":
    key = jax.random.PRNGKey(0)
    k0, k1, k2, k3, k4, k5 = jax.random.split(key, 6)

    # 17x17 RGB -> conv3x3/s2 -> 8x8 features (so avg_pool2d(8) pools the full
    # map, as in InceptionV3). dim_feats is a lane-dense (x128) stand-in for 2048.
    N, Cin, H, W = 2, 3, 17, 17
    dim_feats, num_classes = 256, 10

    x = jax.random.normal(k0, (N, Cin, H, W), jnp.float32)
    w_conv = 0.1 * jax.random.normal(k1, (3, 3, Cin, dim_feats), jnp.float32)
    bn_scale = 1.0 + 0.01 * jax.random.normal(k2, (1, dim_feats), jnp.float32)
    bn_shift = 0.01 * jax.random.normal(k3, (1, dim_feats), jnp.float32)
    w_lin = 0.1 * jax.random.normal(k4, (dim_feats, num_classes), jnp.float32)
    b_lin = 0.01 * jax.random.normal(k5, (num_classes,), jnp.float32)

    params = (w_conv, bn_scale, bn_shift, w_lin, b_lin)

    fwd = jax.jit(image_bone_forward)
    pooled, logits = fwd(x, params)
    jax.block_until_ready((pooled, logits))

    ref_pooled, ref_logits = reference_forward(x, params)
    assert pooled.shape == (N, dim_feats) and logits.shape == (N, num_classes)
    assert jnp.allclose(pooled, ref_pooled, atol=2e-3, rtol=2e-3), (
        float(jnp.max(jnp.abs(pooled - ref_pooled))))
    assert jnp.allclose(logits, ref_logits, atol=2e-3, rtol=2e-3), (
        float(jnp.max(jnp.abs(logits - ref_logits))))

    print("KERNEL_OK")
</pallas_src>

<mosaic_0001>
module attributes {stable_mosaic.version = 11 : i64} {
  func.func @fused_stem_head_kernel(%arg0: i32, %arg1: memref<8x64x128xbf16, #tpu.memory_space<vmem>>, %arg2: memref<128x256xbf16, #tpu.memory_space<vmem>>, %arg3: memref<1x256xf32, #tpu.memory_space<vmem>>, %arg4: memref<256x128xbf16, #tpu.memory_space<vmem>>, %arg5: memref<1x128xf32, #tpu.memory_space<vmem>>, %arg6: memref<8x256xf32, #tpu.memory_space<vmem>>, %arg7: memref<8x128xf32, #tpu.memory_space<vmem>>) attributes {dimension_semantics = [#tpu.dimension_semantics<parallel>], iteration_bounds = array<i64: 1>, scalar_prefetch = 0 : i64, scratch_operands = 0 : i64, tpu.core_type = #tpu.core_type<tc>, window_params = [{transform_indices = @transform_0, window_bounds = array<i64: 8, 64, 128>}, {pipeline_mode = #tpu.pipeline_mode<synchronous>, transform_indices = @transform_1, window_bounds = array<i64: 128, 256>}, {pipeline_mode = #tpu.pipeline_mode<synchronous>, transform_indices = @transform_2, window_bounds = array<i64: 1, 256>}, {pipeline_mode = #tpu.pipeline_mode<synchronous>, transform_indices = @transform_3, window_bounds = array<i64: 256, 128>}, {pipeline_mode = #tpu.pipeline_mode<synchronous>, transform_indices = @transform_4, window_bounds = array<i64: 1, 128>}, {transform_indices = @transform_5, window_bounds = array<i64: 8, 256>}, {transform_indices = @transform_6, window_bounds = array<i64: 8, 128>}]} {
    %c0 = arith.constant 0 : index
    %c0_0 = arith.constant 0 : index
    %c0_1 = arith.constant 0 : index
    %0 = vector.load %arg1[%c0, %c0_0, %c0_1] : memref<8x64x128xbf16, #tpu.memory_space<vmem>>, vector<8x64x128xbf16>
    %1 = vector.shape_cast %0 : vector<8x64x128xbf16> to vector<512x128xbf16>
    %c0_2 = arith.constant 0 : index
    %c0_3 = arith.constant 0 : index
    %2 = vector.load %arg2[%c0_2, %c0_3] : memref<128x256xbf16, #tpu.memory_space<vmem>>, vector<128x256xbf16>
    %cst = arith.constant dense<0.000000e+00> : vector<512x256xf32>
    %3 = tpu.matmul %1, %2, %cst {dimension_numbers = #tpu.dot_dimension_numbers<[1], [0], [0], [1], [0, 0, 1, 1], [], []>} : vector<512x128xbf16>, vector<128x256xbf16>, vector<512x256xf32> -> vector<512x256xf32>
    %c0_4 = arith.constant 0 : index
    %c0_5 = arith.constant 0 : index
    %4 = vector.load %arg3[%c0_4, %c0_5] : memref<1x256xf32, #tpu.memory_space<vmem>>, vector<1x256xf32>
    %5 = vector.broadcast %4 : vector<1x256xf32> to vector<512x256xf32>
    %6 = arith.addf %3, %5 : vector<512x256xf32>
    %cst_6 = arith.constant 0.000000e+00 : f32
    %7 = vector.broadcast %cst_6 : f32 to vector<512x256xf32>
    %8 = arith.maximumf %6, %7 : vector<512x256xf32>
    %9 = vector.shape_cast %8 : vector<512x256xf32> to vector<8x64x256xf32>
    %cst_7 = arith.constant dense<0.000000e+00> : vector<8x256xf32>
    %10 = vector.multi_reduction <add>, %9, %cst_7 [1] : vector<8x64x256xf32> to vector<8x256xf32>
    %cst_8 = arith.constant 6.400000e+01 : f32
    %11 = vector.broadcast %cst_8 : f32 to vector<8x256xf32>
    %12 = arith.divf %10, %11 : vector<8x256xf32>
    %c0_9 = arith.constant 0 : index
    %c0_10 = arith.constant 0 : index
    %13 = vector.load %arg6[%c0_9, %c0_10] : memref<8x256xf32, #tpu.memory_space<vmem>>, vector<8x256xf32>
    tpu.vector_store %arg6[%c0_9, %c0_10], %12 {strides = array<i32>} : memref<8x256xf32, #tpu.memory_space<vmem>>, vector<8x256xf32>,
    %14 = arith.truncf %12 : vector<8x256xf32> to vector<8x256xbf16>
    %c0_11 = arith.constant 0 : index
    %c0_12 = arith.constant 0 : index
    %15 = vector.load %arg4[%c0_11, %c0_12] : memref<256x128xbf16, #tpu.memory_space<vmem>>, vector<256x128xbf16>
    %cst_13 = arith.constant dense<0.000000e+00> : vector<8x128xf32>
    %16 = tpu.matmul %14, %15, %cst_13 {dimension_numbers = #tpu.dot_dimension_numbers<[1], [0], [0], [1], [0, 0, 1, 1], [], []>} : vector<8x256xbf16>, vector<256x128xbf16>, vector<8x128xf32> -> vector<8x128xf32>
    %c0_14 = arith.constant 0 : index
    %c0_15 = arith.constant 0 : index
    %17 = vector.load %arg5[%c0_14, %c0_15] : memref<1x128xf32, #tpu.memory_space<vmem>>, vector<1x128xf32>
    %18 = vector.broadcast %17 : vector<1x128xf32> to vector<8x128xf32>
    %19 = arith.addf %16, %18 : vector<8x128xf32>
    %c0_16 = arith.constant 0 : index
    %c0_17 = arith.constant 0 : index
    %20 = vector.load %arg7[%c0_16, %c0_17] : memref<8x128xf32, #tpu.memory_space<vmem>>, vector<8x128xf32>
    tpu.vector_store %arg7[%c0_16, %c0_17], %19 {strides = array<i32>} : memref<8x128xf32, #tpu.memory_space<vmem>>, vector<8x128xf32>,
    return
  }
  func.func @transform_0(%arg0: i32) -> (i32, i32, i32) {
    %c0_i32 = arith.constant 0 : i32
    %c0_i32_0 = arith.constant 0 : i32
    %c0_i32_1 = arith.constant 0 : i32
    return %arg0, %c0_i32, %c0_i32_0 : i32, i32, i32
  }
  func.func @transform_1(%arg0: i32) -> (i32, i32) {
    %c0_i32 = arith.constant 0 : i32
    %c0_i32_0 = arith.constant 0 : i32
    %c0_i32_1 = arith.constant 0 : i32
    return %c0_i32, %c0_i32_0 : i32, i32
  }
  func.func @transform_2(%arg0: i32) -> (i32, i32) {
    %c0_i32 = arith.constant 0 : i32
    %c0_i32_0 = arith.constant 0 : i32
    %c0_i32_1 = arith.constant 0 : i32
    return %c0_i32, %c0_i32_0 : i32, i32
  }
  func.func @transform_3(%arg0: i32) -> (i32, i32) {
    %c0_i32 = arith.constant 0 : i32
    %c0_i32_0 = arith.constant 0 : i32
    %c0_i32_1 = arith.constant 0 : i32
    return %c0_i32, %c0_i32_0 : i32, i32
  }
  func.func @transform_4(%arg0: i32) -> (i32, i32) {
    %c0_i32 = arith.constant 0 : i32
    %c0_i32_0 = arith.constant 0 : i32
    %c0_i32_1 = arith.constant 0 : i32
    return %c0_i32, %c0_i32_0 : i32, i32
  }
  func.func @transform_5(%arg0: i32) -> (i32, i32) {
    %c0_i32 = arith.constant 0 : i32
    %c0_i32_0 = arith.constant 0 : i32
    return %arg0, %c0_i32 : i32, i32
  }
  func.func @transform_6(%arg0: i32) -> (i32, i32) {
    %c0_i32 = arith.constant 0 : i32
    %c0_i32_0 = arith.constant 0 : i32
    return %arg0, %c0_i32 : i32, i32
  }
}

</mosaic_0001>

<bundles_post_ra>
// kernel: image_bone_forward.1
= control target key start
LH: loop header
LB: loop body
LE: loop exit
PB: predicated region body
PF: predicated region fallthrough
CT: control target
= control target key end

     0   :  { %v1560_v1 = vmov 0   ;;  %v105_v55 = vlaneseq  ;;  %vm1109_vm0 = vcmask 1041409   ;;  %vm1111_vm1 = vcmask 1042434   ;;  %s2113_s1 = inlined_call_operand.vmem [shape: bf16[128,256], index: 1, kind: input, shape index: {}]   ;;  %s2114_s0 = inlined_call_operand.vmem [shape: bf16[8,64,128], index: 0, kind: input, shape index: {}]   ;;  %s2115_s3 = inlined_call_operand.vmem [shape: bf16[256,128], index: 3, kind: input, shape index: {}]   ;;  %s2116_s2 = inlined_call_operand.vmem [shape: f32[1,256], index: 2, kind: input, shape index: {}]   ;;  %s2117_s5 = inlined_call_operand.vmem [shape: f32[8,256], index: 5, kind: output, shape index: {0}]   ;;  %s2118_s4 = inlined_call_operand.vmem [shape: f32[1,128], index: 4, kind: input, shape index: {}]   ;;  %s2119_s6 = inlined_call_operand.vmem [shape: f32[8,128], index: 6, kind: output, shape index: {1}]  }
   0x1   :  { %v1488_v0 = vld [vmem:[%s2113_s1 + $0x4] ss:$8 sps:$4 sm:$0xff]   ;;  %419 = vmatprep.mubr.bf16.mxu0 %v1560_v1  ;;  %589 = vmatprep.mubr.bf16.mxu1 %v1560_v1  ;;  %v1490_v2 = vld [vmem:[%s2113_s1] ss:$8 sps:$4 sm:$0xff]   ;;  %v1491_v3 = vld [vmem:[%s2113_s1 + $0x14] ss:$8 sps:$4 sm:$0xff]  }
   0x2   :  { %387 = vmatprep.subr.bf16.mxu0 %v1488_v0  ;;  %1471 = vmatprep.subr.bf16.mxu1 %v1488_v0  ;;  %v1493_v4 = vld [vmem:[%s2113_s1 + $0x10] ss:$8 sps:$4 sm:$0xff]   ;;  %v1494_v5 = vld [vmem:[%s2113_s1 + $0x24] ss:$8 sps:$4 sm:$0xff]   ;;  %v1496_v6 = vld [vmem:[%s2113_s1 + $0x20] ss:$8 sps:$4 sm:$0xff]  }
   0x3   :  { %388 = vmatpush1.bf16.msra.mxu0 %v1490_v2  ;;  %1479 = vmatpush1.bf16.msra.mxu1 %v1490_v2  ;;  %v1497_v7 = vld [vmem:[%s2113_s1 + $0x34] ss:$8 sps:$4 sm:$0xff]   ;;  %v1499_v8 = vld [vmem:[%s2113_s1 + $0x30] ss:$8 sps:$4 sm:$0xff]   ;;  %v1500_v9 = vld [vmem:[%s2113_s1 + $0x44] ss:$8 sps:$4 sm:$0xff]  }
   0x4   :  { %389 = vmatprep.subr.bf16.mxu0 %v1491_v3  ;;  %1472 = vmatprep.subr.bf16.mxu1 %v1491_v3  ;;  %v1502_v10 = vld [vmem:[%s2113_s1 + $0x40] ss:$8 sps:$4 sm:$0xff]   ;;  %v1503_v11 = vld [vmem:[%s2113_s1 + $0x54] ss:$8 sps:$4 sm:$0xff]   ;;  %v1505_v12 = vld [vmem:[%s2113_s1 + $0x50] ss:$8 sps:$4 sm:$0xff]  }
   0x5   :  { %v1506_v13 = vld [vmem:[%s2113_s1 + $0x64] ss:$8 sps:$4 sm:$0xff]   ;;  %v1508_v14 = vld [vmem:[%s2113_s1 + $0x60] ss:$8 sps:$4 sm:$0xff]   ;;  %v1509_v15 = vld [vmem:[%s2113_s1 + $0x74] ss:$8 sps:$4 sm:$0xff]  }
   0x6   :  { %v1511_v16 = vld [vmem:[%s2113_s1 + $0x70] ss:$8 sps:$4 sm:$0xff]   ;;  %v1512_v17 = vld [vmem:[%s2114_s0] sm:$0xff]   ;;  %v1514_v18 = vld [vmem:[%s2114_s0 + $0x88] sm:$0xff]   ;;  %v106_v58 = vshrl.u32 %v105_v55, 7  ;;  %vm1113_vm2 = vcmask 1043459  }
   0x7   :  { %390 = vmatpush1.bf16.msra.mxu0 %v1493_v4  ;;  %1480 = vmatpush1.bf16.msra.mxu1 %v1493_v4  ;;  %v1513_v19 = vld [vmem:[%s2114_s0 + $0x8] sm:$0xff]   ;;  %v1516_v20 = vld [vmem:[%s2114_s0 + $0x90] sm:$0xff]   ;;  %v1518_v22 = vld [vmem:[%s2114_s0 + $0x98] sm:$0xff]   ;;  %vm1115_vm3 = vcmask 1044484   ;;  %vm1117_vm4 = vcmask 1045509   ;;  %vm1119_vm5 = vcmask 1046534  }
   0x8   :  { %391 = vmatprep.subr.bf16.mxu0 %v1494_v5  ;;  %1473 = vmatprep.subr.bf16.mxu1 %v1494_v5  ;;  %v1515_v21 = vld [vmem:[%s2114_s0 + $0x10] sm:$0xff]   ;;  %v1517_v23 = vld [vmem:[%s2114_s0 + $0x18] sm:$0xff]   ;;  %v1520_v24 = vld [vmem:[%s2114_s0 + $0xa0] sm:$0xff]   ;;  %v107_v61 = vsub.s32 0, %v106_v58  ;;  %v111_v63 = vsub.s32 1, %v106_v58  ;;  %vm1121_vm6 = vcmask 1047559  }
   0x9   :  { %v1519_v25 = vld [vmem:[%s2114_s0 + $0x20] sm:$0xff]   ;;  %v1522_v26 = vld [vmem:[%s2114_s0 + $0xa8] sm:$0xff]   ;;  %v1524_v28 = vld [vmem:[%s2114_s0 + $0xb0] sm:$0xff]  }
   0xa   :  { %v1521_v27 = vld [vmem:[%s2114_s0 + $0x28] sm:$0xff]   ;;  %v1523_v29 = vld [vmem:[%s2114_s0 + $0x30] sm:$0xff]   ;;  %v1526_v30 = vld [vmem:[%s2114_s0 + $0xb8] sm:$0xff]  }
   0xb   :  { %392 = vmatpush1.bf16.msra.mxu0 %v1496_v6  ;;  %1481 = vmatpush1.bf16.msra.mxu1 %v1496_v6  ;;  %v1525_v31 = vld [vmem:[%s2114_s0 + $0x38] sm:$0xff]   ;;  %v1528_v32 = vld [vmem:[%s2114_s0 + $0xc0] sm:$0xff]   ;;  %v1530_v34 = vld [vmem:[%s2114_s0 + $0xc8] sm:$0xff]  }
   0xc   :  { %393 = vmatprep.subr.bf16.mxu0 %v1497_v7  ;;  %1474 = vmatprep.subr.bf16.mxu1 %v1497_v7  ;;  %v1527_v33 = vld [vmem:[%s2114_s0 + $0x40] sm:$0xff]   ;;  %v1529_v35 = vld [vmem:[%s2114_s0 + $0x48] sm:$0xff]   ;;  %v1532_v36 = vld [vmem:[%s2114_s0 + $0xd0] sm:$0xff]  }
   0xd   :  { %v1531_v37 = vld [vmem:[%s2114_s0 + $0x50] sm:$0xff]   ;;  %v1534_v38 = vld [vmem:[%s2114_s0 + $0xd8] sm:$0xff]   ;;  %v1536_v40 = vld [vmem:[%s2114_s0 + $0xe0] sm:$0xff]  }
   0xe   :  { %v1533_v39 = vld [vmem:[%s2114_s0 + $0x58] sm:$0xff]   ;;  %v1535_v41 = vld [vmem:[%s2114_s0 + $0x60] sm:$0xff]   ;;  %v1538_v42 = vld [vmem:[%s2114_s0 + $0xe8] sm:$0xff]  }
   0xf   :  { %394 = vmatpush1.bf16.msra.mxu0 %v1499_v8  ;;  %1482 = vmatpush1.bf16.msra.mxu1 %v1499_v8  ;;  %v1537_v43 = vld [vmem:[%s2114_s0 + $0x68] sm:$0xff]   ;;  %v1540_v44 = vld [vmem:[%s2114_s0 + $0xf0] sm:$0xff]   ;;  %v1542_v46 = vld [vmem:[%s2114_s0 + $0xf8] sm:$0xff]  }
  0x10   :  { %395 = vmatprep.subr.bf16.mxu0 %v1500_v9  ;;  %1475 = vmatprep.subr.bf16.mxu1 %v1500_v9  ;;  %v1539_v45 = vld [vmem:[%s2114_s0 + $0x70] sm:$0xff]   ;;  %v1541_v47 = vld [vmem:[%s2114_s0 + $0x78] sm:$0xff]   ;;  %v1543_v48 = vld [vmem:[%s2114_s0 + $0x80] sm:$0xff]  }
  0x11   :  { %v1544_v49 = vld [vmem:[%s2115_s3 + $0x40] sm:$0xff]   ;;  %v1546_v51 = vld [vmem:[%s2115_s3 + $0x48] sm:$0xff]   ;;  %v1548_v53 = vld [vmem:[%s2115_s3 + $0x50] sm:$0xff]  }
  0x12   :  { %v1545_v50 = vld [vmem:[%s2115_s3] sm:$0xff]   ;;  %v1547_v52 = vld [vmem:[%s2115_s3 + $0x8] sm:$0xff]   ;;  %v1549_v54 = vld [vmem:[%s2115_s3 + $0x10] sm:$0xff]  }
  0x13   :  { %396 = vmatpush1.bf16.msra.mxu0 %v1502_v10  ;;  %1483 = vmatpush1.bf16.msra.mxu1 %v1502_v10  ;;  %v1550_v56 = vld [vmem:[%s2115_s3 + $0x58] sm:$0xff]   ;;  %v1552_v59 = vld [vmem:[%s2115_s3 + $0x60] sm:$0xff]  }
  0x14   :  { %397 = vmatprep.subr.bf16.mxu0 %v1503_v11  ;;  %1476 = vmatprep.subr.bf16.mxu1 %v1503_v11  ;;  %v1551_v57 = vld [vmem:[%s2115_s3 + $0x18] sm:$0xff]   ;;  %v1553_v60 = vld [vmem:[%s2115_s3 + $0x20] sm:$0xff]  }
  0x15   :  { %v103_v62 = vld [vmem:[%s2116_s2] sm:$0x3] }
  0x16   :  { %v1805_v0 = vrot.slane %v103_v62, %v107_v61 }
  0x17   :  { %398 = vmatpush1.bf16.msra.mxu0 %v1505_v12  ;;  %1484 = vmatpush1.bf16.msra.mxu1 %v1505_v12 }
  0x18   :  { %399 = vmatprep.subr.bf16.mxu0 %v1506_v13  ;;  %1477 = vmatprep.subr.bf16.mxu1 %v1506_v13 }
  0x1b   :  { %400 = vmatpush1.bf16.msra.mxu0 %v1508_v14  ;;  %1485 = vmatpush1.bf16.msra.mxu1 %v1508_v14 }
  0x1c   :  { %401 = vmatprep.subr.bf16.mxu0 %v1509_v15  ;;  %1478 = vmatprep.subr.bf16.mxu1 %v1509_v15 }
  0x1f   :  { %402 = vmatpush1.bf16.msra.mxu0 %v1511_v16  ;;  %1486 = vmatpush1.bf16.msra.mxu1 %v1511_v16 }
  0x20   :  { %1449 = vmatprep.subr.bf16.mxu1 %v1544_v49 }
  0x22   :  { %420 = vmatmul.mubr.bf16.vlgmr.msra.gmra.mrb[0].mxu0 %v1512_v17  ;;  %590 = vmatmul.mubr.bf16.vlgmr.msra.gmra.mrb[0].mxu1 %v1514_v18 }
  0x23   :  { %429 = vmatprep.mubr.bf16.mxu0 %v1560_v1  ;;  %599 = vmatprep.mubr.bf16.mxu1 %v1560_v1 }
  0x24   :  { %1450 = vmatpush3.bf16.msra.mxu1 %v1545_v50 }
  0x25   :  { %1451 = vmatprep.subr.bf16.mxu1 %v1546_v51 }
  0x28   :  { %1452 = vmatpush3.bf16.msra.mxu1 %v1547_v52  ;;  %v1554_v52 = vld [vmem:[%s2115_s3 + $0x68] sm:$0xff]  }
  0x29   :  { %1453 = vmatprep.subr.bf16.mxu1 %v1548_v53 }
  0x2a   :  { %430 = vmatmul.mubr.bf16.gmra.mrb[4].mxu0 %v1513_v19  ;;  %600 = vmatmul.mubr.bf16.gmra.mrb[4].mxu1 %v1516_v20 }
  0x2b   :  { %439 = vmatprep.mubr.bf16.mxu0 %v1560_v1  ;;  %609 = vmatprep.mubr.bf16.mxu1 %v1560_v1 }
  0x2c   :  { %1454 = vmatpush3.bf16.msra.mxu1 %v1549_v54 }
  0x2d   :  { %1455 = vmatprep.subr.bf16.mxu1 %v1550_v56 }
  0x30   :  { %1456 = vmatpush3.bf16.msra.mxu1 %v1551_v57 }
  0x31   :  { %1457 = vmatprep.subr.bf16.mxu1 %v1552_v59 }
  0x32   :  { %440 = vmatmul.mubr.bf16.gmra.mrb[8].mxu0 %v1515_v21  ;;  %610 = vmatmul.mubr.bf16.gmra.mrb[8].mxu1 %v1518_v22 }
  0x33   :  { %449 = vmatprep.mubr.bf16.mxu0 %v1560_v1  ;;  %619 = vmatprep.mubr.bf16.mxu1 %v1560_v1 }
  0x34   :  { %1458 = vmatpush3.bf16.msra.mxu1 %v1553_v60 }
  0x35   :  { %1459 = vmatprep.subr.bf16.mxu1 %v1554_v52 }
  0x3a   :  { %450 = vmatmul.mubr.bf16.gmra.mrb[12].mxu0 %v1517_v23  ;;  %620 = vmatmul.mubr.bf16.gmra.mrb[12].mxu1 %v1520_v24 }
  0x3b   :  { %459 = vmatprep.mubr.bf16.mxu0 %v1560_v1  ;;  %629 = vmatprep.mubr.bf16.mxu1 %v1560_v1 }
  0x42   :  { %460 = vmatmul.mubr.bf16.gmra.mrb[16].mxu0 %v1519_v25  ;;  %630 = vmatmul.mubr.bf16.gmra.mrb[16].mxu1 %v1522_v26 }
  0x43   :  { %469 = vmatprep.mubr.bf16.mxu0 %v1560_v1  ;;  %639 = vmatprep.mubr.bf16.mxu1 %v1560_v1 }
  0x4a   :  { %470 = vmatmul.mubr.bf16.gmra.mrb[20].mxu0 %v1521_v27  ;;  %640 = vmatmul.mubr.bf16.gmra.mrb[20].mxu1 %v1524_v28 }
  0x4b   :  { %479 = vmatprep.mubr.bf16.mxu0 %v1560_v1  ;;  %649 = vmatprep.mubr.bf16.mxu1 %v1560_v1 }
  0x52   :  { %480 = vmatmul.mubr.bf16.gmra.mrb[24].mxu0 %v1523_v29  ;;  %650 = vmatmul.mubr.bf16.gmra.mrb[24].mxu1 %v1526_v30 }
  0x53   :  { %489 = vmatprep.mubr.bf16.mxu0 %v1560_v1  ;;  %659 = vmatprep.mubr.bf16.mxu1 %v1560_v1 }
  0x5a   :  { %490 = vmatmul.mubr.bf16.gmra.mrb[28].mxu0 %v1525_v31  ;;  %660 = vmatmul.mubr.bf16.gmra.mrb[28].mxu1 %v1528_v32 }
  0x5b   :  { %499 = vmatprep.mubr.bf16.mxu0 %v1560_v1  ;;  %669 = vmatprep.mubr.bf16.mxu1 %v1560_v1 }
  0x62   :  { %500 = vmatmul.mubr.bf16.gmra.mrb[32].mxu0 %v1527_v33  ;;  %670 = vmatmul.mubr.bf16.gmra.mrb[32].mxu1 %v1530_v34 }
  0x63   :  { %509 = vmatprep.mubr.bf16.mxu0 %v1560_v1  ;;  %679 = vmatprep.mubr.bf16.mxu1 %v1560_v1 }
  0x6a   :  { %510 = vmatmul.mubr.bf16.gmra.mrb[36].mxu0 %v1529_v35  ;;  %680 = vmatmul.mubr.bf16.gmra.mrb[36].mxu1 %v1532_v36 }
  0x6b   :  { %519 = vmatprep.mubr.bf16.mxu0 %v1560_v1  ;;  %689 = vmatprep.mubr.bf16.mxu1 %v1560_v1 }
  0x72   :  { %520 = vmatmul.mubr.bf16.gmra.mrb[40].mxu0 %v1531_v37  ;;  %690 = vmatmul.mubr.bf16.gmra.mrb[40].mxu1 %v1534_v38 }
  0x73   :  { %529 = vmatprep.mubr.bf16.mxu0 %v1560_v1  ;;  %699 = vmatprep.mubr.bf16.mxu1 %v1560_v1 }
  0x7a   :  { %530 = vmatmul.mubr.bf16.gmra.mrb[44].mxu0 %v1533_v39  ;;  %700 = vmatmul.mubr.bf16.gmra.mrb[44].mxu1 %v1536_v40 }
  0x7b   :  { %539 = vmatprep.mubr.bf16.mxu0 %v1560_v1  ;;  %709 = vmatprep.mubr.bf16.mxu1 %v1560_v1 }
  0x82   :  { %540 = vmatmul.mubr.bf16.gmra.mrb[48].mxu0 %v1535_v41  ;;  %710 = vmatmul.mubr.bf16.gmra.mrb[48].mxu1 %v1538_v42 }
  0x83   :  { %549 = vmatprep.mubr.bf16.mxu0 %v1560_v1  ;;  %719 = vmatprep.mubr.bf16.mxu1 %v1560_v1 }
  0x8a   :  { %550 = vmatmul.mubr.bf16.gmra.mrb[52].mxu0 %v1537_v43  ;;  %720 = vmatmul.mubr.bf16.gmra.mrb[52].mxu1 %v1540_v44 }
  0x8b   :  { %559 = vmatprep.mubr.bf16.mxu0 %v1560_v1  ;;  %729 = vmatprep.mubr.bf16.mxu1 %v1560_v1 }
  0x92   :  { %560 = vmatmul.mubr.bf16.gmra.mrb[56].mxu0 %v1539_v45  ;;  %730 = vmatmul.mubr.bf16.gmra.mrb[56].mxu1 %v1542_v46 }
  0x93   :  { %569 = vmatprep.mubr.bf16.mxu0 %v1560_v1 }
  0x9a   :  { %570 = vmatmul.mubr.bf16.gmra.mrb[60].mxu0 %v1541_v47 }
  0x9b   :  { %579 = vmatprep.mubr.bf16.mxu0 %v1560_v1  ;;  %v1807_v1 = vrot.slane %v103_v62, %v111_v63 }
  0xa2   :  { %580 = vmatmul.mubr.bf16.gmra.mrb[64].mxu0 %v1543_v48 }
  0xf5   :  { %v421_v2 = vpop.f32.mrb[0].mxu0  ;;  %v1809_v3 = vpop.f32.mrb[0].mxu1 }
  0xf6   :  { %v422_v4 = vadd.f32 %v421_v2, %v1805_v0  ;;  %v423_v5 = vpop.f32.mrb[1].mxu0  ;;  %v1812_v6 = vpop.f32.mrb[1].mxu1 }
  0xf7   :  { %v424_v7 = vadd.f32 %v423_v5, %v1807_v1  ;;  %v425_v8 = vpop.f32.mrb[2].mxu0  ;;  %v1815_v9 = vpop.f32.mrb[2].mxu1 }
  0xf8   :  { %v426_v10 = vadd.f32 %v425_v8, %v1805_v0  ;;  %v427_v11 = vpop.f32.mrb[3].mxu0  ;;  %v1818_v12 = vpop.f32.mrb[3].mxu1  ;;  %v740_v14 = vmax.f32 %v422_v4, 0.0 }
  0xf9   :  { %v428_v13 = vadd.f32 %v427_v11, %v1807_v1  ;;  %v741_v16 = vmax.f32 %v424_v7, 0.0 }
  0xfa   :  { %v742_v15 = vmax.f32 %v426_v10, 0.0 }
  0xfb   :  { %v743_v17 = vmax.f32 %v428_v13, 0.0 }
  0xfc   :  { %v868_v18 = vadd.f32 %v742_v15, %v740_v14 }
  0xfd   :  { %v881_v19 = vadd.f32 %v743_v17, %v741_v16  ;;  %v431_v20 = vpop.f32.mrb[4].mxu0  ;;  %v1821_v21 = vpop.f32.mrb[4].mxu1 }
  0xfe   :  { %v432_v22 = vadd.f32 %v431_v20, %v1805_v0  ;;  %v433_v23 = vpop.f32.mrb[5].mxu0  ;;  %v1824_v24 = vpop.f32.mrb[5].mxu1 }
  0xff   :  { %v434_v25 = vadd.f32 %v433_v23, %v1807_v1  ;;  %v435_v26 = vpop.f32.mrb[6].mxu0  ;;  %v1827_v27 = vpop.f32.mrb[6].mxu1 }
 0x100   :  { %v744_v28 = vmax.f32 %v432_v22, 0.0  ;;  %v436_v29 = vadd.f32 %v435_v26, %v1805_v0  ;;  %v437_v30 = vpop.f32.mrb[7].mxu0  ;;  %v1830_v31 = vpop.f32.mrb[7].mxu1 }
 0x101   :  { %v745_v32 = vmax.f32 %v434_v25, 0.0  ;;  %v438_v33 = vadd.f32 %v437_v30, %v1807_v1 }
 0x102   :  { %v869_v34 = vadd.f32 %v868_v18, %v744_v28  ;;  %v746_v35 = vmax.f32 %v436_v29, 0.0 }
 0x103   :  { %v882_v36 = vadd.f32 %v881_v19, %v745_v32  ;;  %v747_v37 = vmax.f32 %v438_v33, 0.0 }
 0x104   :  { %v870_v38 = vadd.f32 %v869_v34, %v746_v35 }
 0x105   :  { %v883_v39 = vadd.f32 %v882_v36, %v747_v37  ;;  %v441_v40 = vpop.f32.mrb[8].mxu0  ;;  %v1833_v41 = vpop.f32.mrb[8].mxu1 }
 0x106   :  { %v442_v42 = vadd.f32 %v441_v40, %v1805_v0  ;;  %v443_v43 = vpop.f32.mrb[9].mxu0  ;;  %v1836_v44 = vpop.f32.mrb[9].mxu1 }
 0x107   :  { %v444_v45 = vadd.f32 %v443_v43, %v1807_v1  ;;  %v445_v46 = vpop.f32.mrb[10].mxu0  ;;  %v1839_v47 = vpop.f32.mrb[10].mxu1 }
 0x108   :  { %v748_v48 = vmax.f32 %v442_v42, 0.0  ;;  %v446_v49 = vadd.f32 %v445_v46, %v1805_v0  ;;  %v447_v50 = vpop.f32.mrb[11].mxu0  ;;  %v1842_v51 = vpop.f32.mrb[11].mxu1 }
 0x109   :  { %v749_v53 = vmax.f32 %v444_v45, 0.0  ;;  %v448_v54 = vadd.f32 %v447_v50, %v1807_v1 }
 0x10a   :  { %v871_v55 = vadd.f32 %v870_v38, %v748_v48  ;;  %v750_v56 = vmax.f32 %v446_v49, 0.0 }
 0x10b   :  { %v884_v57 = vadd.f32 %v883_v39, %v749_v53  ;;  %v751_v58 = vmax.f32 %v448_v54, 0.0 }
 0x10c   :  { %v872_v59 = vadd.f32 %v871_v55, %v750_v56  ;;  %v1555_v55 = vld [vmem:[%s2115_s3 + $0x28] sm:$0xff]   ;;  %v1556_v56 = vld [vmem:[%s2115_s3 + $0x70] sm:$0xff]  }
 0x10d   :  { %v885_v60 = vadd.f32 %v884_v57, %v751_v58  ;;  %v451_v61 = vpop.f32.mrb[12].mxu0  ;;  %v621_v62 = vpop.f32.mrb[12].mxu1  ;;  %1460 = vmatpush3.bf16.msra.mxu1 %v1555_v55 }
 0x10e   :  { %v452_v63 = vadd.f32 %v451_v61, %v1805_v0  ;;  %v453_v2 = vpop.f32.mrb[13].mxu0  ;;  %v622_v4 = vadd.f32 %v621_v62, %v1805_v0  ;;  %v623_v5 = vpop.f32.mrb[13].mxu1  ;;  %1461 = vmatprep.subr.bf16.mxu1 %v1556_v56 }
 0x10f   :  { %v454_v7 = vadd.f32 %v453_v2, %v1807_v1  ;;  %v455_v8 = vpop.f32.mrb[14].mxu0  ;;  %v624_v10 = vadd.f32 %v623_v5, %v1807_v1  ;;  %v625_v11 = vpop.f32.mrb[14].mxu1  ;;  %v1557_v2 = vld [vmem:[%s2115_s3 + $0x30] sm:$0xff]  }
 0x110   :  { %v752_v13 = vmax.f32 %v452_v63, 0.0  ;;  %v456_v14 = vadd.f32 %v455_v8, %v1805_v0  ;;  %v457_v15 = vpop.f32.mrb[15].mxu0  ;;  %v820_v16 = vmax.f32 %v622_v4, 0.0  ;;  %v626_v17 = vadd.f32 %v625_v11, %v1805_v0  ;;  %v627_v18 = vpop.f32.mrb[15].mxu1 }
 0x111   :  { %v753_v19 = vmax.f32 %v454_v7, 0.0  ;;  %v458_v20 = vadd.f32 %v457_v15, %v1807_v1  ;;  %v821_v22 = vmax.f32 %v624_v10, 0.0  ;;  %v628_v23 = vadd.f32 %v627_v18, %v1807_v1  ;;  %v1558_v10 = vld [vmem:[%s2115_s3 + $0x78] sm:$0xff]   ;;  %1462 = vmatpush3.bf16.msra.mxu1 %v1557_v2 }
 0x112   :  { %v873_v25 = vadd.f32 %v872_v59, %v752_v13  ;;  %v754_v26 = vmax.f32 %v456_v14, 0.0  ;;  %v822_v28 = vmax.f32 %v626_v17, 0.0  ;;  %1463 = vmatprep.subr.bf16.mxu1 %v1558_v10 }
 0x113   :  { %v886_v29 = vadd.f32 %v885_v60, %v753_v19  ;;  %v755_v30 = vmax.f32 %v458_v20, 0.0  ;;  %v823_v32 = vmax.f32 %v628_v23, 0.0 }
 0x114   :  { %v874_v33 = vadd.f32 %v873_v25, %v754_v26  ;;  %v998_v34 = vadd.f32 %v822_v28, %v820_v16  ;;  %v1559_v26 = vld [vmem:[%s2115_s3 + $0x38] sm:$0xff]  }
 0x115   :  { %v887_v35 = vadd.f32 %v886_v29, %v755_v30  ;;  %v461_v36 = vpop.f32.mrb[16].mxu0  ;;  %v1011_v37 = vadd.f32 %v823_v32, %v821_v22  ;;  %v631_v38 = vpop.f32.mrb[16].mxu1  ;;  %1464 = vmatpush3.bf16.msra.mxu1 %v1559_v26 }
 0x116   :  { %v462_v39 = vadd.f32 %v461_v36, %v1805_v0  ;;  %v463_v40 = vpop.f32.mrb[17].mxu0  ;;  %v632_v42 = vadd.f32 %v631_v38, %v1805_v0  ;;  %v633_v43 = vpop.f32.mrb[17].mxu1  ;;  %v875_v57 = vrot.slane %v874_v33, 4 }
 0x117   :  { %v464_v45 = vadd.f32 %v463_v40, %v1807_v1  ;;  %v465_v46 = vpop.f32.mrb[18].mxu0  ;;  %v634_v48 = vadd.f32 %v633_v43, %v1807_v1  ;;  %v635_v49 = vpop.f32.mrb[18].mxu1  ;;  %v888_v18 = vrot.slane %v887_v35, 4 }
 0x118   :  { %v466_v50 = vadd.f32 %v465_v46, %v1805_v0  ;;  %v467_v52 = vpop.f32.mrb[19].mxu0  ;;  %v824_v53 = vmax.f32 %v632_v42, 0.0  ;;  %v637_v54 = vpop.f32.mrb[19].mxu1  ;;  %v756_v60 = vmax.f32 %v462_v39, 0.0  ;;  %v636_v63 = vadd.f32 %v635_v49, %v1805_v0 }
 0x119   :  { %v468_v58 = vadd.f32 %v467_v52, %v1807_v1  ;;  %v825_v59 = vmax.f32 %v634_v48, 0.0  ;;  %v757_v4 = vmax.f32 %v464_v45, 0.0  ;;  %v638_v8 = vadd.f32 %v637_v54, %v1807_v1 }
 0x11a   :  { %v758_v61 = vmax.f32 %v466_v50, 0.0  ;;  %v999_v62 = vadd.f32 %v998_v34, %v824_v53  ;;  %v826_v13 = vmax.f32 %v636_v63, 0.0  ;;  %v876_v28 = vadd.f32 %v875_v57, %v874_v33 }
 0x11b   :  { %v759_v5 = vmax.f32 %v468_v58, 0.0  ;;  %v1012_v7 = vadd.f32 %v1011_v37, %v825_v59  ;;  %v827_v16 = vmax.f32 %v638_v8, 0.0  ;;  %v889_v48 = vadd.f32 %v888_v18, %v887_v35 }
 0x11c   :  { %v894_v11 = vadd.f32 %v758_v61, %v756_v60  ;;  %v1000_v22 = vadd.f32 %v999_v62, %v826_v13  ;;  %v877_v52 = vrot.slane %v876_v28, 2 }
 0x11d   :  { %v907_v14 = vadd.f32 %v759_v5, %v757_v4  ;;  %v471_v15 = vpop.f32.mrb[20].mxu0  ;;  %v641_v17 = vpop.f32.mrb[20].mxu1  ;;  %v1013_v32 = vadd.f32 %v1012_v7, %v827_v16  ;;  %v890_v62 = vrot.slane %v889_v48, 2 }
 0x11e   :  { %v472_v19 = vadd.f32 %v471_v15, %v1805_v0  ;;  %v473_v20 = vpop.f32.mrb[21].mxu0  ;;  %v642_v23 = vadd.f32 %v641_v17, %v1805_v0  ;;  %v643_v25 = vpop.f32.mrb[21].mxu1  ;;  %v878_v7 = vadd.f32 %v877_v52, %v876_v28 }
 0x11f   :  { %v474_v29 = vadd.f32 %v473_v20, %v1807_v1  ;;  %v475_v30 = vpop.f32.mrb[22].mxu0  ;;  %v644_v34 = vadd.f32 %v643_v25, %v1807_v1  ;;  %v645_v36 = vpop.f32.mrb[22].mxu1 }
 0x120   :  { %v760_v37 = vmax.f32 %v472_v19, 0.0  ;;  %v476_v38 = vadd.f32 %v475_v30, %v1805_v0  ;;  %v477_v39 = vpop.f32.mrb[23].mxu0  ;;  %v828_v40 = vmax.f32 %v642_v23, 0.0  ;;  %v647_v42 = vpop.f32.mrb[23].mxu1  ;;  %v646_v57 = vadd.f32 %v645_v36, %v1805_v0 }
 0x121   :  { %v761_v43 = vmax.f32 %v474_v29, 0.0  ;;  %v478_v45 = vadd.f32 %v477_v39, %v1807_v1  ;;  %v829_v46 = vmax.f32 %v644_v34, 0.0  ;;  %v648_v58 = vadd.f32 %v647_v42, %v1807_v1 }
 0x122   :  { %v895_v33 = vadd.f32 %v894_v11, %v760_v37  ;;  %v762_v49 = vmax.f32 %v476_v38, 0.0  ;;  %v1001_v50 = vadd.f32 %v1000_v22, %v828_v40  ;;  %v830_v2 = vmax.f32 %v646_v57, 0.0 }
 0x123   :  { %v908_v53 = vadd.f32 %v907_v14, %v761_v43  ;;  %v763_v54 = vmax.f32 %v478_v45, 0.0  ;;  %v1014_v55 = vadd.f32 %v1013_v32, %v829_v46  ;;  %v831_v4 = vmax.f32 %v648_v58, 0.0 }
 0x124   :  { %v896_v56 = vadd.f32 %v895_v33, %v762_v49  ;;  %v1002_v18 = vadd.f32 %v1001_v50, %v830_v2  ;;  %v891_v39 = vadd.f32 %v890_v62, %v889_v48 }
 0x125   :  { %v909_v59 = vadd.f32 %v908_v53, %v763_v54  ;;  %v481_v60 = vpop.f32.mrb[24].mxu0  ;;  %v651_v61 = vpop.f32.mrb[24].mxu1  ;;  %v1015_v19 = vadd.f32 %v1014_v55, %v831_v4 }
 0x126   :  { %v482_v63 = vadd.f32 %v481_v60, %v1805_v0  ;;  %v483_v35 = vpop.f32.mrb[25].mxu0  ;;  %v653_v5 = vpop.f32.mrb[25].mxu1  ;;  %v652_v11 = vadd.f32 %v651_v61, %v1805_v0  ;;  %v892_v60 = vrot.slane %v891_v39, 1 }
 0x127   :  { %v484_v8 = vadd.f32 %v483_v35, %v1807_v1  ;;  %v485_v10 = vpop.f32.mrb[26].mxu0  ;;  %v654_v13 = vadd.f32 %v653_v5, %v1807_v1  ;;  %v655_v14 = vpop.f32.mrb[26].mxu1 }
 0x128   :  { %v764_v15 = vmax.f32 %v482_v63, 0.0  ;;  %v486_v16 = vadd.f32 %v485_v10, %v1805_v0  ;;  %v487_v17 = vpop.f32.mrb[27].mxu0  ;;  %v657_v20 = vpop.f32.mrb[27].mxu1  ;;  %v832_v25 = vmax.f32 %v652_v11, 0.0  ;;  %v656_v30 = vadd.f32 %v655_v14, %v1805_v0 }
 0x129   :  { %v765_v22 = vmax.f32 %v484_v8, 0.0  ;;  %v488_v23 = vadd.f32 %v487_v17, %v1807_v1  ;;  %v833_v26 = vmax.f32 %v654_v13, 0.0  ;;  %v658_v32 = vadd.f32 %v657_v20, %v1807_v1 }
 0x12a   :  { %v897_v28 = vadd.f32 %v896_v56, %v764_v15  ;;  %v766_v29 = vmax.f32 %v486_v16, 0.0  ;;  %v1003_v37 = vadd.f32 %v1002_v18, %v832_v25  ;;  %v834_v42 = vmax.f32 %v656_v30, 0.0 }
 0x12b   :  { %v910_v34 = vadd.f32 %v909_v59, %v765_v22  ;;  %v767_v36 = vmax.f32 %v488_v23, 0.0  ;;  %v1016_v38 = vadd.f32 %v1015_v19, %v833_v26  ;;  %v835_v43 = vmax.f32 %v658_v32, 0.0 }
 0x12c   :  { %v898_v40 = vadd.f32 %v897_v28, %v766_v29  ;;  %v1896_v52 = vadd.f32 %v1003_v37, %v834_v42  ;;  %v879_v59 = vrot.slane %v878_v7, 1  ;;  %v893_v18 = vadd.f32 %v892_v60, %v891_v39 }
 0x12d   :  { %v911_v45 = vadd.f32 %v910_v34, %v767_v36  ;;  %v491_v46 = vpop.f32.mrb[28].mxu0  ;;  %v661_v33 = vpop.f32.mrb[28].mxu1  ;;  %v1898_v53 = vadd.f32 %v1016_v38, %v835_v43 }
 0x12e   :  { %v492_v49 = vadd.f32 %v491_v46, %v1805_v0  ;;  %v493_v50 = vpop.f32.mrb[29].mxu0  ;;  %v662_v54 = vadd.f32 %v661_v33, %v1805_v0  ;;  %v663_v55 = vpop.f32.mrb[29].mxu1  ;;  %v880_v17 = vadd.f32 %v879_v59, %v878_v7  ;;  %v1078_v39 = vmul.f32 0.015625, %v893_v18 }
 0x12f   :  { %v494_v56 = vadd.f32 %v493_v50, %v1807_v1  ;;  %v495_v57 = vpop.f32.mrb[30].mxu0  ;;  %v664_v48 = vadd.f32 %v663_v55, %v1807_v1  ;;  %v665_v58 = vpop.f32.mrb[30].mxu1 }
 0x130   :  { %v768_v61 = vmax.f32 %v492_v49, 0.0  ;;  %v496_v62 = vadd.f32 %v495_v57, %v1805_v0  ;;  %v497_v63 = vpop.f32.mrb[31].mxu0  ;;  %v667_v35 = vpop.f32.mrb[31].mxu1  ;;  %v836_v10 = vmax.f32 %v662_v54, 0.0  ;;  %v666_v15 = vadd.f32 %v665_v58, %v1805_v0 }
 0x131   :  { %v769_v2 = vmax.f32 %v494_v56, 0.0  ;;  %v498_v4 = vadd.f32 %v497_v63, %v1807_v1  ;;  %v837_v11 = vmax.f32 %v664_v48, 0.0  ;;  %v668_v16 = vadd.f32 %v667_v35, %v1807_v1 }
 0x132   :  { %v899_v5 = vadd.f32 %v898_v40, %v768_v61  ;;  %v770_v8 = vmax.f32 %v496_v62, 0.0  ;;  %v838_v23 = vmax.f32 %v666_v15, 0.0  ;;  %v1077_v7 = vmul.f32 0.015625, %v880_v17 }
 0x133   :  { %v912_v13 = vadd.f32 %v911_v45, %v769_v2  ;;  %v771_v14 = vmax.f32 %v498_v4, 0.0  ;;  %v839_v25 = vmax.f32 %v668_v16, 0.0  ;;  %v1135_v62 = vpack.c.bf16 %v1078_v39, %v1078_v39 }
 0x134   :  { %v900_v19 = vadd.f32 %v899_v5, %v770_v8  ;;  %v1024_v38 = vadd.f32 %v838_v23, %v836_v10  ;;  %v1134_v61 = vpack.c.bf16 %v1077_v7, %v1077_v7 }
 0x135   :  { %v913_v20 = vadd.f32 %v912_v13, %v771_v14  ;;  %v501_v22 = vpop.f32.mrb[32].mxu0  ;;  %v671_v26 = vpop.f32.mrb[32].mxu1  ;;  %v1037_v40 = vadd.f32 %v839_v25, %v837_v11 }
 0x136   :  { %v901_v28 = vrot.slane %v900_v19, 4  ;;  %v502_v29 = vadd.f32 %v501_v22, %v1805_v0  ;;  %v503_v30 = vpop.f32.mrb[33].mxu0  ;;  %v673_v32 = vpop.f32.mrb[33].mxu1  ;;  %v672_v57 = vadd.f32 %v671_v26, %v1805_v0  ;;  %v1205_v25 = vunpack.c.l.b16 %v1134_v61 }
 0x137   :  { %v914_v34 = vrot.slane %v913_v20, 4  ;;  %v504_v36 = vadd.f32 %v503_v30, %v1807_v1  ;;  %v505_v37 = vpop.f32.mrb[34].mxu0  ;;  %v675_v42 = vpop.f32.mrb[34].mxu1  ;;  %v674_v60 = vadd.f32 %v673_v32, %v1807_v1  ;;  %v1206_v26 = vunpack.c.l.b16 %v1135_v62 }
 0x138   :  { %v902_v43 = vadd.f32 %v901_v28, %v900_v19  ;;  %v507_v45 = vpop.f32.mrb[35].mxu0  ;;  %v677_v46 = vpop.f32.mrb[35].mxu1  ;;  %v506_v49 = vadd.f32 %v505_v37, %v1805_v0  ;;  %v772_v55 = vmax.f32 %v502_v29, 0.0  ;;  %v840_v35 = vmax.f32 %v672_v57, 0.0 }
 0x139   :  { %v915_v33 = vadd.f32 %v914_v34, %v913_v20  ;;  %v508_v50 = vadd.f32 %v507_v45, %v1807_v1  ;;  %v773_v56 = vmax.f32 %v504_v36, 0.0  ;;  %v841_v10 = vmax.f32 %v674_v60, 0.0 }
 0x13a   :  { %v903_v54 = vrot.slane %v902_v43, 2  ;;  %v774_v58 = vmax.f32 %v506_v49, 0.0  ;;  %v1025_v20 = vadd.f32 %v1024_v38, %v840_v35  ;;  %v676_v49 = vadd.f32 %v675_v42, %v1805_v0 }
 0x13b   :  { %v916_v48 = vrot.slane %v915_v33, 2  ;;  %v775_v59 = vmax.f32 %v508_v50, 0.0  ;;  %v1038_v22 = vadd.f32 %v1037_v40, %v841_v10  ;;  %v678_v38 = vadd.f32 %v677_v46, %v1807_v1 }
 0x13c   :  { %v904_v63 = vadd.f32 %v903_v54, %v902_v43  ;;  %v920_v4 = vadd.f32 %v774_v58, %v772_v55 }
 0x13d   :  { %v917_v2 = vadd.f32 %v916_v48, %v915_v33  ;;  %v933_v5 = vadd.f32 %v775_v59, %v773_v56  ;;  %v511_v8 = vpop.f32.mrb[36].mxu0  ;;  %v681_v11 = vpop.f32.mrb[36].mxu1  ;;  %v842_v48 = vmax.f32 %v676_v49, 0.0  ;;  %v843_v58 = vmax.f32 %v678_v38, 0.0 }
 0x13e   :  { %v905_v13 = vrot.slane %v904_v63, 1  ;;  %v512_v14 = vadd.f32 %v511_v8, %v1805_v0  ;;  %v513_v15 = vpop.f32.mrb[37].mxu0  ;;  %v683_v16 = vpop.f32.mrb[37].mxu1 }
 0x13f   :  { %v918_v17 = vrot.slane %v917_v2, 1  ;;  %v514_v18 = vadd.f32 %v513_v15, %v1807_v1  ;;  %v515_v19 = vpop.f32.mrb[38].mxu0  ;;  %v685_v23 = vpop.f32.mrb[38].mxu1 }
 0x140   :  { %v906_v28 = vadd.f32 %v905_v13, %v904_v63  ;;  %v776_v29 = vmax.f32 %v512_v14, 0.0  ;;  %v517_v30 = vpop.f32.mrb[39].mxu0  ;;  %v687_v32 = vpop.f32.mrb[39].mxu1  ;;  %v516_v37 = vadd.f32 %v515_v19, %v1805_v0  ;;  %v682_v14 = vadd.f32 %v681_v11, %v1805_v0 }
 0x141   :  { %v919_v34 = vadd.f32 %v918_v17, %v917_v2  ;;  %v777_v36 = vmax.f32 %v514_v18, 0.0  ;;  %v518_v43 = vadd.f32 %v517_v30, %v1807_v1  ;;  %v688_v49 = vadd.f32 %v687_v32, %v1807_v1 }
 0x142   :  { %v1079_v45 = vmul.f32 0.015625, %v906_v28  ;;  %v921_v33 = vadd.f32 %v920_v4, %v776_v29  ;;  %v778_v54 = vmax.f32 %v516_v37, 0.0  ;;  %v1026_v4 = vadd.f32 %v1025_v20, %v842_v48 }
 0x143   :  { %v1080_v40 = vmul.f32 0.015625, %v919_v34  ;;  %v934_v50 = vadd.f32 %v933_v5, %v777_v36  ;;  %v779_v55 = vmax.f32 %v518_v43, 0.0  ;;  %v1039_v5 = vadd.f32 %v1038_v22, %v843_v58 }
 0x144   :  { %v1920_v56 = vsel %vm1109_vm0, %v1079_v45, %v1077_v7  ;;  %v1136_v57 = vpack.c.bf16 %v1079_v45, %v1079_v45  ;;  %v922_v61 = vadd.f32 %v921_v33, %v778_v54  ;;  %v686_v20 = vadd.f32 %v685_v23, %v1805_v0 }
 0x145   :  { %v1923_v59 = vsel %vm1109_vm0, %v1080_v40, %v1078_v39  ;;  %v1137_v60 = vpack.c.bf16 %v1080_v40, %v1080_v40  ;;  %v935_v62 = vadd.f32 %v934_v50, %v779_v55  ;;  %v521_v63 = vpop.f32.mrb[40].mxu0  ;;  %v691_v42 = vpop.f32.mrb[40].mxu1  ;;  %v684_v39 = vadd.f32 %v683_v16, %v1807_v1 }
 0x146   :  { %v1207_v35 = vunpack.c.l.b16 %v1136_v57  ;;  %v522_v46 = vadd.f32 %v521_v63, %v1805_v0  ;;  %v523_v2 = vpop.f32.mrb[41].mxu0  ;;  %v693_v8 = vpop.f32.mrb[41].mxu1  ;;  %v844_v11 = vmax.f32 %v682_v14, 0.0  ;;  %v846_v43 = vmax.f32 %v686_v20, 0.0 }
 0x147   :  { %v1208_v7 = vunpack.c.l.b16 %v1137_v60  ;;  %v524_v10 = vadd.f32 %v523_v2, %v1807_v1  ;;  %v525_v13 = vpop.f32.mrb[42].mxu0  ;;  %v695_v15 = vpop.f32.mrb[42].mxu1  ;;  %v845_v37 = vmax.f32 %v684_v39, 0.0  ;;  %v692_v23 = vadd.f32 %v691_v42, %v1805_v0 }
 0x148   :  { %v1930_v17 = vsel %vm1109_vm0, %v1207_v35, %v1205_v25  ;;  %v780_v18 = vmax.f32 %v522_v46, 0.0  ;;  %v526_v19 = vadd.f32 %v525_v13, %v1805_v0  ;;  %v527_v28 = vpop.f32.mrb[43].mxu0  ;;  %v697_v22 = vpop.f32.mrb[43].mxu1  ;;  %v1027_v33 = vadd.f32 %v1026_v4, %v844_v11 }
 0x149   :  { %v1935_v29 = vsel %vm1109_vm0, %v1208_v7, %v1206_v26  ;;  %v781_v30 = vmax.f32 %v524_v10, 0.0  ;;  %v528_v34 = vadd.f32 %v527_v28, %v1807_v1  ;;  %v1040_v40 = vadd.f32 %v1039_v5, %v845_v37 }
 0x14a   :  { %v923_v36 = vadd.f32 %v922_v61, %v780_v18  ;;  %v782_v16 = vmax.f32 %v526_v19, 0.0  ;;  %v694_v26 = vadd.f32 %v693_v8, %v1807_v1  ;;  %v1028_v55 = vadd.f32 %v1027_v33, %v846_v43 }
 0x14b   :  { %v936_v25 = vadd.f32 %v935_v62, %v781_v30  ;;  %v783_v45 = vmax.f32 %v528_v34, 0.0  ;;  %v847_v57 = vmax.f32 %v688_v49, 0.0  ;;  %v696_v48 = vadd.f32 %v695_v15, %v1805_v0 }
 0x14c   :  { %v924_v38 = vadd.f32 %v923_v36, %v782_v16  ;;  %v848_v62 = vmax.f32 %v692_v23, 0.0  ;;  %v849_v63 = vmax.f32 %v694_v26, 0.0  ;;  %v698_v32 = vadd.f32 %v697_v22, %v1807_v1 }
 0x14d   :  { %v937_v50 = vadd.f32 %v936_v25, %v783_v45  ;;  %v531_v54 = vpop.f32.mrb[44].mxu0  ;;  %v701_v58 = vpop.f32.mrb[44].mxu1  ;;  %v1041_v42 = vadd.f32 %v1040_v40, %v847_v57  ;;  %v850_v4 = vmax.f32 %v696_v48, 0.0 }
 0x14e   :  { %v532_v60 = vadd.f32 %v531_v54, %v1805_v0  ;;  %v533_v61 = vpop.f32.mrb[45].mxu0  ;;  %v703_v35 = vpop.f32.mrb[45].mxu1  ;;  %v702_v5 = vadd.f32 %v701_v58, %v1805_v0  ;;  %v1029_v13 = vadd.f32 %v1028_v55, %v848_v62  ;;  %v851_v39 = vmax.f32 %v698_v32, 0.0 }
 0x14f   :  { %v534_v46 = vadd.f32 %v533_v61, %v1807_v1  ;;  %v535_v2 = vpop.f32.mrb[46].mxu0  ;;  %v705_v8 = vpop.f32.mrb[46].mxu1  ;;  %v1042_v28 = vadd.f32 %v1041_v42, %v849_v63  ;;  %v704_v11 = vadd.f32 %v703_v35, %v1807_v1 }
 0x150   :  { %v784_v7 = vmax.f32 %v532_v60, 0.0  ;;  %v536_v10 = vadd.f32 %v535_v2, %v1805_v0  ;;  %v537_v14 = vpop.f32.mrb[47].mxu0  ;;  %v707_v15 = vpop.f32.mrb[47].mxu1  ;;  %v852_v20 = vmax.f32 %v702_v5, 0.0  ;;  %v1948_v34 = vadd.f32 %v1029_v13, %v850_v4 }
 0x151   :  { %v785_v18 = vmax.f32 %v534_v46, 0.0  ;;  %v538_v19 = vadd.f32 %v537_v14, %v1807_v1  ;;  %v1951_v37 = vadd.f32 %v1042_v28, %v851_v39  ;;  %v706_v43 = vadd.f32 %v705_v8, %v1805_v0 }
 0x152   :  { %v925_v22 = vadd.f32 %v924_v38, %v784_v7  ;;  %v786_v30 = vmax.f32 %v536_v10, 0.0  ;;  %v708_v45 = vadd.f32 %v707_v15, %v1807_v1  ;;  %v853_v55 = vmax.f32 %v704_v11, 0.0 }
 0x153   :  { %v938_v36 = vadd.f32 %v937_v50, %v785_v18  ;;  %v787_v16 = vmax.f32 %v538_v19, 0.0  ;;  %v854_v40 = vmax.f32 %v706_v43, 0.0 }
 0x154   :  { %v926_v25 = vadd.f32 %v925_v22, %v786_v30  ;;  %v855_v57 = vmax.f32 %v708_v45, 0.0 }
 0x155   :  { %v939_v33 = vadd.f32 %v938_v36, %v787_v16  ;;  %v541_v49 = vpop.f32.mrb[48].mxu0  ;;  %v711_v23 = vpop.f32.mrb[48].mxu1  ;;  %v1050_v61 = vadd.f32 %v854_v40, %v852_v20  ;;  %v1963_v36 = vadd.f32 %v1809_v3, %v1805_v0 }
 0x156   :  { %v927_v26 = vrot.slane %v926_v25, 4  ;;  %v542_v38 = vadd.f32 %v541_v49, %v1805_v0  ;;  %v543_v54 = vpop.f32.mrb[49].mxu0  ;;  %v713_v48 = vpop.f32.mrb[49].mxu1  ;;  %v1063_v7 = vadd.f32 %v855_v57, %v853_v55  ;;  %v712_v39 = vadd.f32 %v711_v23, %v1805_v0 }
 0x157   :  { %v940_v50 = vrot.slane %v939_v33, 4  ;;  %v544_v58 = vadd.f32 %v543_v54, %v1807_v1  ;;  %v545_v60 = vpop.f32.mrb[50].mxu0  ;;  %v715_v62 = vpop.f32.mrb[50].mxu1  ;;  %v714_v19 = vadd.f32 %v713_v48, %v1807_v1  ;;  %v1969_v54 = vadd.f32 %v1812_v6, %v1807_v1 }
 0x158   :  { %v928_v63 = vadd.f32 %v927_v26, %v926_v25  ;;  %v546_v32 = vadd.f32 %v545_v60, %v1805_v0  ;;  %v547_v35 = vpop.f32.mrb[51].mxu0  ;;  %v717_v46 = vpop.f32.mrb[51].mxu1  ;;  %v788_v5 = vmax.f32 %v542_v38, 0.0  ;;  %v856_v30 = vmax.f32 %v712_v39, 0.0 }
 0x159   :  { %v941_v42 = vadd.f32 %v940_v50, %v939_v33  ;;  %v548_v2 = vadd.f32 %v547_v35, %v1807_v1  ;;  %v789_v13 = vmax.f32 %v544_v58, 0.0  ;;  %v857_v26 = vmax.f32 %v714_v19, 0.0 }
 0x15a   :  { %v929_v4 = vrot.slane %v928_v63, 2  ;;  %v790_v8 = vmax.f32 %v546_v32, 0.0  ;;  %v1051_v23 = vadd.f32 %v1050_v61, %v856_v30  ;;  %v1974_v58 = vadd.f32 %v1815_v9, %v1805_v0 }
 0x15b   :  { %v942_v10 = vrot.slane %v941_v42, 2  ;;  %v791_v14 = vmax.f32 %v548_v2, 0.0  ;;  %v1979_v32 = vadd.f32 %v1818_v12, %v1807_v1  ;;  %v716_v19 = vadd.f32 %v715_v62, %v1805_v0 }
 0x15c   :  { %v930_v15 = vadd.f32 %v929_v4, %v928_v63  ;;  %v946_v18 = vadd.f32 %v790_v8, %v788_v5  ;;  %v1064_v8 = vadd.f32 %v1063_v7, %v857_v26 }
 0x15d   :  { %v943_v28 = vadd.f32 %v942_v10, %v941_v42  ;;  %v959_v20 = vadd.f32 %v791_v14, %v789_v13  ;;  %v551_v22 = vpop.f32.mrb[52].mxu0  ;;  %v721_v11 = vpop.f32.mrb[52].mxu1  ;;  %v1983_v10 = vadd.f32 %v1821_v21, %v1805_v0 }
 0x15e   :  { %v931_v16 = vrot.slane %v930_v15, 1  ;;  %v552_v43 = vadd.f32 %v551_v22, %v1805_v0  ;;  %v553_v25 = vpop.f32.mrb[53].mxu0  ;;  %v723_v45 = vpop.f32.mrb[53].mxu1  ;;  %v718_v22 = vadd.f32 %v717_v46, %v1807_v1 }
 0x15f   :  { %v944_v33 = vrot.slane %v943_v28, 1  ;;  %v554_v49 = vadd.f32 %v553_v25, %v1807_v1  ;;  %v555_v40 = vpop.f32.mrb[54].mxu0  ;;  %v725_v38 = vpop.f32.mrb[54].mxu1  ;;  %v858_v25 = vmax.f32 %v716_v19, 0.0 }
 0x160   :  { %v932_v55 = vadd.f32 %v931_v16, %v930_v15  ;;  %v792_v3 = vmax.f32 %v552_v43, 0.0  ;;  %v556_v57 = vadd.f32 %v555_v40, %v1805_v0  ;;  %v557_v48 = vpop.f32.mrb[55].mxu0  ;;  %v727_v50 = vpop.f32.mrb[55].mxu1  ;;  %v859_v46 = vmax.f32 %v718_v22, 0.0 }
 0x161   :  { %v945_v60 = vadd.f32 %v944_v33, %v943_v28  ;;  %v793_v63 = vmax.f32 %v554_v49, 0.0  ;;  %v558_v61 = vadd.f32 %v557_v48, %v1807_v1  ;;  %v724_v33 = vadd.f32 %v723_v45, %v1807_v1 }
 0x162   :  { %v1081_v6 = vmul.f32 0.015625, %v932_v55  ;;  %v947_v35 = vadd.f32 %v946_v18, %v792_v3  ;;  %v794_v42 = vmax.f32 %v556_v57, 0.0  ;;  %v1052_v48 = vadd.f32 %v1051_v23, %v858_v25 }
 0x163   :  { %v1082_v2 = vmul.f32 0.015625, %v945_v60  ;;  %v960_v4 = vadd.f32 %v959_v20, %v793_v63  ;;  %v795_v5 = vmax.f32 %v558_v61, 0.0  ;;  %v861_v45 = vmax.f32 %v724_v33, 0.0 }
 0x164   :  { %v1987_v9 = vsel %vm1111_vm1, %v1081_v6, %v1920_v56  ;;  %v1138_v13 = vpack.c.bf16 %v1081_v6, %v1081_v6  ;;  %v948_v14 = vadd.f32 %v947_v35, %v794_v42  ;;  %v722_v56 = vadd.f32 %v721_v11, %v1805_v0 }
 0x165   :  { %v1991_v12 = vsel %vm1111_vm1, %v1082_v2, %v1923_v59  ;;  %v1139_v39 = vpack.c.bf16 %v1082_v2, %v1082_v2  ;;  %v961_v15 = vadd.f32 %v960_v4, %v795_v5  ;;  %v561_v18 = vpop.f32.mrb[56].mxu0  ;;  %v731_v7 = vpop.f32.mrb[56].mxu1  ;;  %v1065_v6 = vadd.f32 %v1064_v8, %v859_v46 }
 0x166   :  { %v1209_v28 = vunpack.c.l.b16 %v1138_v13  ;;  %v562_v21 = vadd.f32 %v561_v18, %v1805_v0  ;;  %v563_v20 = vpop.f32.mrb[57].mxu0  ;;  %v733_v30 = vpop.f32.mrb[57].mxu1  ;;  %v860_v60 = vmax.f32 %v722_v56, 0.0  ;;  %v728_v13 = vadd.f32 %v727_v50, %v1807_v1 }
 0x167   :  { %v1210_v16 = vunpack.c.l.b16 %v1139_v39  ;;  %v564_v43 = vadd.f32 %v563_v20, %v1807_v1  ;;  %v565_v59 = vpop.f32.mrb[58].mxu0  ;;  %v735_v49 = vpop.f32.mrb[58].mxu1  ;;  %v1066_v5 = vadd.f32 %v1065_v6, %v861_v45  ;;  %v732_v39 = vadd.f32 %v731_v7, %v1805_v0 }
 0x168   :  { %v2001_v62 = vsel %vm1111_vm1, %v1209_v28, %v1930_v17  ;;  %v796_v40 = vmax.f32 %v562_v21, 0.0  ;;  %v566_v26 = vadd.f32 %v565_v59, %v1805_v0  ;;  %v567_v55 = vpop.f32.mrb[59].mxu0  ;;  %v737_v3 = vpop.f32.mrb[59].mxu1  ;;  %v1053_v2 = vadd.f32 %v1052_v48, %v860_v60 }
 0x169   :  { %v797_v11 = vmax.f32 %v564_v43, 0.0  ;;  %v568_v57 = vadd.f32 %v567_v55, %v1807_v1  ;;  %v726_v17 = vadd.f32 %v725_v38, %v1805_v0  ;;  %v734_v23 = vadd.f32 %v733_v30, %v1807_v1 }
 0x16a   :  { %v949_v63 = vadd.f32 %v948_v14, %v796_v40  ;;  %v798_v61 = vmax.f32 %v566_v26, 0.0  ;;  %v736_v14 = vadd.f32 %v735_v49, %v1805_v0  ;;  %v863_v21 = vmax.f32 %v728_v13, 0.0 }
 0x16b   :  { %v962_v35 = vadd.f32 %v961_v15, %v797_v11  ;;  %v799_v42 = vmax.f32 %v568_v57, 0.0  ;;  %v862_v28 = vmax.f32 %v726_v17, 0.0  ;;  %v864_v20 = vmax.f32 %v732_v39, 0.0 }
 0x16c   :  { %v950_v4 = vadd.f32 %v949_v63, %v798_v61  ;;  %v738_v38 = vadd.f32 %v737_v3, %v1807_v1  ;;  %v865_v43 = vmax.f32 %v734_v23, 0.0  ;;  %v866_v7 = vmax.f32 %v736_v14, 0.0 }
 0x16d   :  { %v963_v18 = vadd.f32 %v962_v35, %v799_v42  ;;  %v571_v19 = vpop.f32.mrb[60].mxu0  ;;  %v1054_v22 = vadd.f32 %v1053_v2, %v862_v28  ;;  %v1067_v25 = vadd.f32 %v1066_v5, %v863_v21  ;;  %v2016_v49 = vadd.f32 %v1824_v24, %v1807_v1 }
 0x16e   :  { %v572_v8 = vadd.f32 %v571_v19, %v1805_v0  ;;  %v573_v15 = vpop.f32.mrb[61].mxu0  ;;  %v867_v40 = vmax.f32 %v738_v38, 0.0  ;;  %v2021_v48 = vsel %vm1111_vm1, %v1210_v16, %v1935_v29  ;;  %v2025_v60 = vadd.f32 %v1827_v27, %v1805_v0 }
 0x16f   :  { %v574_v56 = vadd.f32 %v573_v15, %v1807_v1  ;;  %v575_v50 = vpop.f32.mrb[62].mxu0  ;;  %v1055_v55 = vadd.f32 %v1054_v22, %v864_v20  ;;  %v1068_v57 = vadd.f32 %v1067_v25, %v865_v43  ;;  %v808_v24 = vmax.f32 %v1963_v36, 0.0 }
 0x170   :  { %v800_v59 = vmax.f32 %v572_v8, 0.0  ;;  %v576_v33 = vadd.f32 %v575_v50, %v1805_v0  ;;  %v577_v30 = vpop.f32.mrb[63].mxu0  ;;  %v2030_v45 = vadd.f32 %v1830_v31, %v1807_v1  ;;  %v809_v2 = vmax.f32 %v1969_v54, 0.0 }
 0x171   :  { %v801_v26 = vmax.f32 %v574_v56, 0.0  ;;  %v578_v46 = vadd.f32 %v577_v30, %v1807_v1  ;;  %v1056_v6 = vadd.f32 %v1055_v55, %v866_v7  ;;  %v1069_v42 = vadd.f32 %v1068_v57, %v867_v40 }
 0x172   :  { %v951_v3 = vadd.f32 %v950_v4, %v800_v59  ;;  %v802_v11 = vmax.f32 %v576_v33, 0.0  ;;  %v810_v29 = vmax.f32 %v1974_v58, 0.0  ;;  %v2036_v16 = vadd.f32 %v1833_v41, %v1805_v0 }
 0x173   :  { %v964_v63 = vadd.f32 %v963_v18, %v801_v26  ;;  %v803_v61 = vmax.f32 %v578_v46, 0.0  ;;  %v811_v4 = vmax.f32 %v1979_v32, 0.0  ;;  %v812_v36 = vmax.f32 %v1983_v10, 0.0 }
 0x174   :  { %v952_v35 = vadd.f32 %v951_v3, %v802_v11  ;;  %v813_v39 = vmax.f32 %v2016_v49, 0.0  ;;  %v814_v54 = vmax.f32 %v2025_v60, 0.0  ;;  %v815_v41 = vmax.f32 %v2030_v45, 0.0 }
 0x175   :  { %v965_v27 = vadd.f32 %v964_v63, %v803_v61  ;;  %v581_v17 = vpop.f32.mrb[64].mxu0  ;;  %v2047_v28 = vadd.f32 %v1836_v44, %v1807_v1  ;;  %v816_v14 = vmax.f32 %v2036_v16, 0.0  ;;  %v1005_v8 = vrot.slane %v1896_v52, 4 }
 0x176   :  { %v953_v5 = vrot.slane %v952_v35, 4  ;;  %v582_v31 = vadd.f32 %v581_v17, %v1805_v0  ;;  %v583_v13 = vpop.f32.mrb[65].mxu0  ;;  %v1018_v20 = vrot.slane %v1898_v53, 4  ;;  %v1031_v44 = vrot.slane %v1948_v34, 4 }
 0x177   :  { %v966_v18 = vrot.slane %v965_v27, 4  ;;  %v584_v58 = vadd.f32 %v583_v13, %v1807_v1  ;;  %v585_v19 = vpop.f32.mrb[66].mxu0  ;;  %v616_v59 = vadd.f32 %v1839_v47, %v1805_v0  ;;  %v1044_v25 = vrot.slane %v1951_v37, 4 }
 0x178   :  { %v954_v32 = vadd.f32 %v953_v5, %v952_v35  ;;  %v586_v10 = vadd.f32 %v585_v19, %v1805_v0  ;;  %v587_v23 = vpop.f32.mrb[67].mxu0  ;;  %v804_v22 = vmax.f32 %v582_v31, 0.0  ;;  %v817_v40 = vmax.f32 %v2047_v28, 0.0 }
 0x179   :  { %v967_v15 = vadd.f32 %v966_v18, %v965_v27  ;;  %v588_v21 = vadd.f32 %v587_v23, %v1807_v1  ;;  %v805_v43 = vmax.f32 %v584_v58, 0.0  ;;  %v1057_v26 = vrot.slane %v1056_v6, 4 }
 0x17a   :  { %v955_v38 = vrot.slane %v954_v32, 2  ;;  %v806_v56 = vmax.f32 %v586_v10, 0.0  ;;  %v1006_v46 = vadd.f32 %v1005_v8, %v1896_v52  ;;  %v1070_v11 = vrot.slane %v1069_v42, 4 }
 0x17b   :  { %v968_v50 = vrot.slane %v967_v15, 2  ;;  %v807_v7 = vmax.f32 %v588_v21, 0.0  ;;  %v1019_v60 = vadd.f32 %v1018_v20, %v1898_v53  ;;  %v1032_v63 = vadd.f32 %v1031_v44, %v1948_v34 }
 0x17c   :  { %v956_v33 = vadd.f32 %v955_v38, %v954_v32  ;;  %v972_v30 = vadd.f32 %v806_v56, %v804_v22  ;;  %v618_v47 = vadd.f32 %v1842_v51, %v1807_v1  ;;  %v1045_v45 = vadd.f32 %v1044_v25, %v1951_v37 }
 0x17d   :  { %v969_v49 = vadd.f32 %v968_v50, %v967_v15  ;;  %v985_v55 = vadd.f32 %v807_v7, %v805_v43  ;;  %v818_v27 = vmax.f32 %v616_v59, 0.0  ;;  %v1058_v5 = vadd.f32 %v1057_v26, %v1056_v6 }
 0x17e   :  { %v957_v3 = vrot.slane %v956_v33, 1  ;;  %v973_v57 = vadd.f32 %v972_v30, %v808_v24  ;;  %v1007_v31 = vrot.slane %v1006_v46, 2  ;;  %v1071_v24 = vadd.f32 %v1070_v11, %v1069_v42 }
 0x17f   :  { %v970_v61 = vrot.slane %v969_v49, 1  ;;  %v986_v0 = vadd.f32 %v985_v55, %v809_v2  ;;  %v1020_v53 = vrot.slane %v1019_v60, 2  ;;  %v1033_v58 = vrot.slane %v1032_v63, 2 }
 0x180   :  { %v958_v35 = vadd.f32 %v957_v3, %v956_v33  ;;  %v974_v16 = vadd.f32 %v973_v57, %v810_v29  ;;  %v1046_v2 = vrot.slane %v1045_v45, 2  ;;  %v819_v42 = vmax.f32 %v618_v47, 0.0 }
 0x181   :  { %v971_v17 = vadd.f32 %v970_v61, %v969_v49  ;;  %v987_v52 = vadd.f32 %v986_v0, %v811_v4  ;;  %v1059_v4 = vrot.slane %v1058_v5, 2  ;;  %v1072_v32 = vrot.slane %v1071_v24, 2 }
 0x182   :  { %v1083_v13 = vmul.f32 0.015625, %v958_v35  ;;  %v975_v18 = vadd.f32 %v974_v16, %v812_v36  ;;  %v1008_v23 = vadd.f32 %v1007_v31, %v1006_v46  ;;  %v1034_v21 = vadd.f32 %v1033_v58, %v1032_v63 }
 0x183   :  { %v1084_v34 = vmul.f32 0.015625, %v971_v17  ;;  %v988_v19 = vadd.f32 %v987_v52, %v813_v39  ;;  %v1021_v39 = vadd.f32 %v1020_v53, %v1019_v60  ;;  %v1073_v22 = vadd.f32 %v1072_v32, %v1071_v24 }
 0x184   :  { %v2067_v1 = vsel %vm1113_vm2, %v1083_v13, %v1987_v9  ;;  %v1140_v51 = vpack.c.bf16 %v1083_v13, %v1083_v13  ;;  %v976_v37 = vadd.f32 %v975_v18, %v814_v54  ;;  %v1047_v9 = vadd.f32 %v1046_v2, %v1045_v45 }
 0x185   :  { %v2071_v29 = vsel %vm1113_vm2, %v1084_v34, %v1991_v12  ;;  %v1141_v6 = vpack.c.bf16 %v1084_v34, %v1084_v34  ;;  %v989_v28 = vadd.f32 %v988_v19, %v815_v41  ;;  %v1060_v12 = vadd.f32 %v1059_v4, %v1058_v5 }
 0x186   :  { %v1211_v36 = vunpack.c.l.b16 %v1140_v51  ;;  %v977_v10 = vadd.f32 %v976_v37, %v816_v14  ;;  %v1009_v14 = vrot.slane %v1008_v23, 1  ;;  %v1022_v44 = vrot.slane %v1021_v39, 1 }
 0x187   :  { %v1212_v8 = vunpack.c.l.b16 %v1141_v6  ;;  %v990_v15 = vadd.f32 %v989_v28, %v817_v40  ;;  %v1035_v43 = vrot.slane %v1034_v21, 1  ;;  %v1048_v7 = vrot.slane %v1047_v9, 1 }
 0x188   :  { %v2075_v54 = vsel %vm1113_vm2, %v1211_v36, %v2001_v62  ;;  %v978_v20 = vadd.f32 %v977_v10, %v818_v27  ;;  %v1061_v25 = vrot.slane %v1060_v12, 1  ;;  %v1074_v30 = vrot.slane %v1073_v22, 1 }
 0x189   :  { %v991_v38 = vadd.f32 %v990_v15, %v819_v42  ;;  %v2079_v41 = vsel %vm1113_vm2, %v1212_v8, %v2021_v48  ;;  %v1010_v40 = vadd.f32 %v1009_v14, %v1008_v23  ;;  %v1023_v49 = vadd.f32 %v1022_v44, %v1021_v39 }
 0x18a   :  { %v979_v56 = vrot.slane %v978_v20, 4  ;;  %v1036_v55 = vadd.f32 %v1035_v43, %v1034_v21  ;;  %v1049_v46 = vadd.f32 %v1048_v7, %v1047_v9  ;;  %v1062_v48 = vadd.f32 %v1061_v25, %v1060_v12 }
 0x18b   :  { %v992_v50 = vrot.slane %v991_v38, 4  ;;  %v1075_v57 = vadd.f32 %v1074_v30, %v1073_v22  ;;  %v1087_v63 = vmul.f32 0.015625, %v1010_v40  ;;  %v1088_v61 = vmul.f32 0.015625, %v1023_v49 }
 0x18c   :  { %v980_v59 = vadd.f32 %v979_v56, %v978_v20  ;;  %v1089_v47 = vmul.f32 0.015625, %v1036_v55  ;;  %v1090_v45 = vmul.f32 0.015625, %v1049_v46  ;;  %v1091_v16 = vmul.f32 0.015625, %v1062_v48 }
 0x18d   :  { %v993_v33 = vadd.f32 %v992_v50, %v991_v38  ;;  %v1092_v17 = vmul.f32 0.015625, %v1075_v57  ;;  %v1144_v52 = vpack.c.bf16 %v1087_v63, %v1087_v63  ;;  %v1145_v31 = vpack.c.bf16 %v1088_v61, %v1088_v61 }
 0x18e   :  { %v981_v62 = vrot.slane %v980_v59, 2  ;;  %v1146_v24 = vpack.c.bf16 %v1089_v47, %v1089_v47  ;;  %v1147_v58 = vpack.c.bf16 %v1090_v45, %v1090_v45  ;;  %v1148_v34 = vpack.c.bf16 %v1091_v16, %v1091_v16 }
 0x18f   :  { %v994_v26 = vrot.slane %v993_v33, 2  ;;  %v1149_v4 = vpack.c.bf16 %v1092_v17, %v1092_v17  ;;  %v1215_v42 = vunpack.c.l.b16 %v1144_v52  ;;  %v1216_v10 = vunpack.c.l.b16 %v1145_v31 }
 0x190   :  { %v982_v3 = vadd.f32 %v981_v62, %v980_v59  ;;  %v1217_v23 = vunpack.c.l.b16 %v1146_v24  ;;  %v1219_v8 = vunpack.c.l.b16 %v1148_v34  ;;  %v1218_v15 = vunpack.c.l.b16 %v1147_v58 }
 0x191   :  { %v995_v11 = vadd.f32 %v994_v26, %v993_v33  ;;  %v1220_v20 = vunpack.c.l.b16 %v1149_v4 }
 0x192   :  { %v983_v60 = vrot.slane %v982_v3, 1 }
 0x193   :  { %v996_v0 = vrot.slane %v995_v11, 1 }
 0x194   :  { %v984_v35 = vadd.f32 %v983_v60, %v982_v3 }
 0x195   :  { %v997_v27 = vadd.f32 %v996_v0, %v995_v11 }
 0x196   :  { %v1085_v5 = vmul.f32 0.015625, %v984_v35 }
 0x197   :  { %v1086_v13 = vmul.f32 0.015625, %v997_v27 }
 0x198   :  { %v1142_v18 = vpack.c.bf16 %v1085_v5, %v1085_v5  ;;  %v1116_v53 = vsel %vm1115_vm3, %v1085_v5, %v2067_v1 }
 0x199   :  { %v1118_v19 = vsel %vm1117_vm4, %v1087_v63, %v1116_v53  ;;  %v1126_v2 = vsel %vm1115_vm3, %v1086_v13, %v2071_v29  ;;  %v1143_v51 = vpack.c.bf16 %v1086_v13, %v1086_v13 }
 0x19a   :  { %v1120_v37 = vsel %vm1119_vm5, %v1089_v47, %v1118_v19  ;;  %v1127_v6 = vsel %vm1117_vm4, %v1088_v61, %v1126_v2  ;;  %v1213_v28 = vunpack.c.l.b16 %v1142_v18 }
 0x19b   :  { %v1122_v36 = vsel %vm1121_vm6, %v1091_v16, %v1120_v37  ;;  %v1128_v32 = vsel %vm1119_vm5, %v1090_v45, %v1127_v6  ;;  %v1214_v1 = vunpack.c.l.b16 %v1143_v51 }
 0x19c   :  { %v1129_v39 = vsel %vm1121_vm6, %v1092_v17, %v1128_v32  ;;  %1132 = vst [vmem:[%s2117_s5] sm:$0xff] %v1122_v36  ;;  %v1224_v29 = vsel %vm1115_vm3, %v1213_v28, %v2075_v54 }
 0x19d   :  { %1133 = vst [vmem:[%s2117_s5 + $0x8] sm:$0xff] %v1129_v39  ;;  %v1231_v21 = vsel %vm1115_vm3, %v1214_v1, %v2079_v41  ;;  %v1225_v9 = vsel %vm1117_vm4, %v1215_v42, %v1224_v29  ;;  %v1432_v41 = vld [vmem:[%s2118_s4] ss:$0 sm:$0xff] }
 0x19e   :  { %v1232_v12 = vsel %vm1117_vm4, %v1216_v10, %v1231_v21  ;;  %v1226_v38 = vsel %vm1119_vm5, %v1217_v23, %v1225_v9 }
 0x19f   :  { %v1233_v22 = vsel %vm1119_vm5, %v1218_v15, %v1232_v12  ;;  %v1227_v54 = vsel %vm1121_vm6, %v1219_v8, %v1226_v38 }
 0x1a0   :  { %v1234_v56 = vsel %vm1121_vm6, %v1220_v20, %v1233_v22  ;;  %v1235_v44 = vpack.c.b16 %v1227_v54, %v1227_v54 }
 0x1a1   :  { %v1236_v14 = vpack.c.b16 %v1234_v56, %v1234_v56 }
 0x1a3   :  { %1367 = vmatprep.mubr.bf16.mxu1 %v1236_v14 }
 0x1a4   :  { %1368 = vmatmul.mubr.bf16.vlgmr.msra.gmra.mrb[60].mxu1 %v1235_v44 }
 0x277   :  { %v1465_v50 = vpop.f32.mrb[60].mxu1 }
 0x278   :  { %v1466_v43 = vpop.f32.mrb[61].mxu1 }
 0x279   :  { %v1467_v7 = vadd.f32 %v1466_v43, %v1465_v50  ;;  %v1468_v59 = vpop.f32.mrb[62].mxu1 }
 0x27a   :  { %v1469_v25 = vpop.f32.mrb[63].mxu1 }
 0x27b   :  { %v1370_v33 = vadd.f32 %v1467_v7, %v1432_v41 }
 0x27d   :  { %1375 = vst [vmem:[%s2119_s6] sm:$0xff] %v1370_v33 }

</bundles_post_ra>
